<compile_context>
chip_gen: v7x
topology: tpu7x:2x2x1
jax: 0.10.0
libtpu: 0.0.40
codegen_flags: <defaults>
</compile_context>

<pallas_src>
import jax
import jax.numpy as jnp
from jax import lax
from jax.experimental import pallas as pl
from jax.experimental.pallas import tpu as pltpu


def ncl2nlc_kernel(x_ref, o_ref):
    """x_ref: (bB, tT, C) block; o_ref: (bB, C, tT) block."""
    bB = x_ref.shape[0]

    def body(b, carry):
        # 2-D transpose on the XLU; avoids any 3-D relayout and keeps the
        # live set to a single (tT, C) tile at a time.
        o_ref[b] = jnp.transpose(x_ref[b], (1, 0))
        return carry

    # Short, static trip count -> fully unrolled for LLO scheduler visibility.
    lax.fori_loop(0, bB, body, 0, unroll=True)


def _plan_tiling(B, T, C, itemsize, *, vmem_budget_bytes=8 << 20, max_bb=8):
    """Pick (batch_block, t_block).

    Prefer whole (T, C) rows, several per step; fall back to tiling T in
    lane-dense multiples of 128 if a single row overflows the VMEM budget
    (budget is conservative so double-buffered tiles fit on v5e/v6e/v7x).
    """
    per_row = 2 * T * C * itemsize            # one input tile + one output tile
    per_row_db = 2 * per_row                  # double buffering by the pipeline
    if per_row_db <= vmem_budget_bytes:
        bb = int(max(1, min(B, max_bb, vmem_budget_bytes // per_row_db)))
        return bb, T
    # One full row does not fit: tile T (C stays full-extent for legality).
    per_128cols_db = 2 * 2 * 128 * C * itemsize
    n128 = int(max(1, vmem_budget_bytes // max(per_128cols_db, 1)))
    tT = min(T, n128 * 128)
    tT = max(128, (tT // 128) * 128)
    # TODO(synk): for extreme C that overflow VMEM even at t_block=128,
    # add a third grid axis tiling C (block (1, tT, cC) -> (1, cC, tT)).
    return 1, tT


def ncl2nlc(x, *, batch_block=None, t_block=None):
    """x: (B, T, C)  ->  (B, C, T), same dtype (pure transpose)."""
    B, T, C = x.shape
    itemsize = jnp.dtype(x.dtype).itemsize
    bb_auto, tt_auto = _plan_tiling(B, T, C, itemsize)
    if batch_block is None:
        batch_block = bb_auto
    if t_block is None:
        t_block = tt_auto

    grid = (pl.cdiv(B, batch_block), pl.cdiv(T, t_block))
    total_bytes = 2 * B * T * C * itemsize    # read everything once, write once

    return pl.pallas_call(
        ncl2nlc_kernel,
        out_shape=jax.ShapeDtypeStruct((B, C, T), x.dtype),
        grid=grid,
        in_specs=[
            pl.BlockSpec((batch_block, t_block, C), lambda i, j: (i, j, 0)),
        ],
        out_specs=pl.BlockSpec((batch_block, C, t_block), lambda i, j: (i, 0, j)),
        compiler_params=pltpu.CompilerParams(
            dimension_semantics=("parallel", "parallel"),
        ),
        cost_estimate=pl.CostEstimate(
            flops=0, transcendentals=0, bytes_accessed=total_bytes
        ),
    )(x)


def ncl2nlc_reference(x):
    return jnp.transpose(x, (0, 2, 1))


if __name__ == "__main__":
    # Input layout implied by the module: (batch, T, Cin).
    # T = 128 keeps the output's lane axis dense (unmasked stores); Cin = 32.
    B, T, C = 2, 128, 32

    key = jax.random.PRNGKey(0)
    x = jax.random.normal(key, (B, T, C), dtype=jnp.float32)

    out = ncl2nlc(x)
    out = jax.block_until_ready(out)

    ref = ncl2nlc_reference(x)
    assert out.shape == (B, C, T)
    assert jnp.array_equal(out, ref)

    print("KERNEL_OK")
</pallas_src>

<mosaic_0001>
module attributes {stable_mosaic.version = 11 : i64} {
  func.func @ncl2nlc_kernel(%arg0: i32, %arg1: i32, %arg2: memref<2x128x32xf32, #tpu.memory_space<vmem>>, %arg3: memref<2x32x128xf32, #tpu.memory_space<vmem>>) attributes {dimension_semantics = [#tpu.dimension_semantics<parallel>, #tpu.dimension_semantics<parallel>], iteration_bounds = array<i64: 1, 1>, scalar_prefetch = 0 : i64, scratch_operands = 0 : i64, tpu.core_type = #tpu.core_type<tc>, window_params = [{transform_indices = @transform_0, window_bounds = array<i64: 2, 128, 32>}, {transform_indices = @transform_1, window_bounds = array<i64: 2, 32, 128>}]} {
    %c0_i32 = arith.constant 0 : i32
    %0 = arith.index_cast %c0_i32 : i32 to index
    %c0 = arith.constant 0 : index
    %c0_0 = arith.constant 0 : index
    %1 = vector.load %arg2[%0, %c0, %c0_0] : memref<2x128x32xf32, #tpu.memory_space<vmem>>, vector<1x128x32xf32>
    %2 = vector.shape_cast %1 : vector<1x128x32xf32> to vector<128x32xf32>
    %3 = tpu.transpose %2, [1, 0] : vector<128x32xf32> -> vector<32x128xf32>
    %4 = arith.index_cast %c0_i32 : i32 to index
    %c0_1 = arith.constant 0 : index
    %c0_2 = arith.constant 0 : index
    %5 = vector.load %arg3[%4, %c0_1, %c0_2] : memref<2x32x128xf32, #tpu.memory_space<vmem>>, vector<1x32x128xf32>
    %6 = vector.shape_cast %5 : vector<1x32x128xf32> to vector<32x128xf32>
    %7 = vector.shape_cast %3 : vector<32x128xf32> to vector<1x32x128xf32>
    tpu.vector_store %arg3[%4, %c0_1, %c0_2], %7 {strides = array<i32>} : memref<2x32x128xf32, #tpu.memory_space<vmem>>, vector<1x32x128xf32>,
    %c1_i32 = arith.constant 1 : i32
    %8 = arith.index_cast %c1_i32 : i32 to index
    %c0_3 = arith.constant 0 : index
    %c0_4 = arith.constant 0 : index
    %9 = vector.load %arg2[%8, %c0_3, %c0_4] : memref<2x128x32xf32, #tpu.memory_space<vmem>>, vector<1x128x32xf32>
    %10 = vector.shape_cast %9 : vector<1x128x32xf32> to vector<128x32xf32>
    %11 = tpu.transpose %10, [1, 0] : vector<128x32xf32> -> vector<32x128xf32>
    %12 = arith.index_cast %c1_i32 : i32 to index
    %c0_5 = arith.constant 0 : index
    %c0_6 = arith.constant 0 : index
    %13 = vector.load %arg3[%12, %c0_5, %c0_6] : memref<2x32x128xf32, #tpu.memory_space<vmem>>, vector<1x32x128xf32>
    %14 = vector.shape_cast %13 : vector<1x32x128xf32> to vector<32x128xf32>
    %15 = vector.shape_cast %11 : vector<32x128xf32> to vector<1x32x128xf32>
    tpu.vector_store %arg3[%12, %c0_5, %c0_6], %15 {strides = array<i32>} : memref<2x32x128xf32, #tpu.memory_space<vmem>>, vector<1x32x128xf32>,
    %c2_i32 = arith.constant 2 : i32
    return
  }
  func.func @transform_0(%arg0: i32, %arg1: i32) -> (i32, i32, i32) {
    %c0_i32 = arith.constant 0 : i32
    %c0_i32_0 = arith.constant 0 : i32
    return %arg0, %arg1, %c0_i32 : i32, i32, i32
  }
  func.func @transform_1(%arg0: i32, %arg1: i32) -> (i32, i32, i32) {
    %c0_i32 = arith.constant 0 : i32
    %c0_i32_0 = arith.constant 0 : i32
    return %arg0, %c0_i32, %arg1 : i32, i32, i32
  }
}

</mosaic_0001>

<bundles_post_ra>
// kernel: tpu_custom_call.1
= control target key start
LH: loop header
LB: loop body
LE: loop exit
PB: predicated region body
PF: predicated region fallthrough
CT: control target
= control target key end

     0   :  { %s295_s0 = inlined_call_operand.vmem [shape: f32[2,128,32], index: 0, kind: input, shape index: {}]   ;;  %s296_s1 = inlined_call_operand.hbm [shape: f32[2,32,128], index: 1, kind: output, shape index: {}]  }
   0x1   :  { %v131_v0 = vld [vmem:[%s295_s0 + $0x80] sm:$0xff]  ;;  %v132_v2 = vld [vmem:[%s295_s0 + $0x88] sm:$0xff]  ;;  %v133_v4 = vld [vmem:[%s295_s0 + $0x90] sm:$0xff] }
   0x2   :  { %v9_v1 = vld [vmem:[%s295_s0] sm:$0xff]  ;;  %78 = vxpose.xlu1.b32.start [1/16] (narrow) %v131_v0, 32  ;;  %v10_v3 = vld [vmem:[%s295_s0 + $0x8] sm:$0xff]  ;;  %v11_v5 = vld [vmem:[%s295_s0 + $0x10] sm:$0xff] }
   0x3   :  { %25 = vxpose.xlu0.b32.start [1/16] (narrow) %v9_v1, 32  ;;  %v134_v6 = vld [vmem:[%s295_s0 + $0x98] sm:$0xff] }
   0x4   :  { %v12_v7 = vld [vmem:[%s295_s0 + $0x18] sm:$0xff] }
   0x6   :  { %79 = vxpose.xlu1.b32.cont [2/16] (narrow) %v132_v2, 32 }
   0x7   :  { %26 = vxpose.xlu0.b32.cont [2/16] (narrow) %v10_v3, 32 }
   0xa   :  { %80 = vxpose.xlu1.b32.cont [3/16] (narrow) %v133_v4, 32 }
   0xb   :  { %27 = vxpose.xlu0.b32.cont [3/16] (narrow) %v11_v5, 32 }
   0xc   :  { %6 = vsyncpa [#allocation3], 0  ;;  %v135_v8 = vld [vmem:[%s295_s0 + $0xa0] sm:$0xff]  ;;  %v136_v10 = vld [vmem:[%s295_s0 + $0xa8] sm:$0xff]  ;;  %s174_s12 = smov [#allocation2]  }
   0xd   :  { %v13_v9 = vld [vmem:[%s295_s0 + $0x20] sm:$0xff]  ;;  %v14_v11 = vld [vmem:[%s295_s0 + $0x28] sm:$0xff]  ;;  %v137_v12 = vld [vmem:[%s295_s0 + $0xb0] sm:$0xff]  ;;  %s120_s13 = sshll.u32 %s174_s12, 4  ;;  %s121_s13 = int_to_ptr.vmem [resolvable:$true] %s120_s13 }
   0xe   :  { %81 = vxpose.xlu1.b32.cont [4/16] (narrow) %v134_v6, 32  ;;  %v15_v13 = vld [vmem:[%s295_s0 + $0x30] sm:$0xff]  ;;  %v138_v14 = vld [vmem:[%s295_s0 + $0xb8] sm:$0xff]  ;;  %v139_v16 = vld [vmem:[%s295_s0 + $0xc0] sm:$0xff]  ;;  %p155_p1 = scmp.lt.s32.totalorder %s121_s13, %s121_s13 }
   0xf   :  { %28 = vxpose.xlu0.b32.cont [4/16] (narrow) %v12_v7, 32  ;;  %v16_v15 = vld [vmem:[%s295_s0 + $0x38] sm:$0xff]  ;;  %v17_v17 = vld [vmem:[%s295_s0 + $0x40] sm:$0xff]  ;;  %v140_v18 = vld [vmem:[%s295_s0 + $0xc8] sm:$0xff] }
  0x10   :  { %v18_v19 = vld [vmem:[%s295_s0 + $0x48] sm:$0xff]  ;;  %v141_v20 = vld [vmem:[%s295_s0 + $0xd0] sm:$0xff]  ;;  %v142_v22 = vld [vmem:[%s295_s0 + $0xd8] sm:$0xff] }
  0x11   :  { %v19_v21 = vld [vmem:[%s295_s0 + $0x50] sm:$0xff]  ;;  %v20_v23 = vld [vmem:[%s295_s0 + $0x58] sm:$0xff]  ;;  %v143_v24 = vld [vmem:[%s295_s0 + $0xe0] sm:$0xff] }
  0x12   :  { %82 = vxpose.xlu1.b32.cont [5/16] (narrow) %v135_v8, 32  ;;  %v21_v25 = vld [vmem:[%s295_s0 + $0x60] sm:$0xff]  ;;  %v144_v26 = vld [vmem:[%s295_s0 + $0xe8] sm:$0xff]  ;;  %v145_v28 = vld [vmem:[%s295_s0 + $0xf0] sm:$0xff] }
  0x13   :  { %29 = vxpose.xlu0.b32.cont [5/16] (narrow) %v13_v9, 32  ;;  %v22_v27 = vld [vmem:[%s295_s0 + $0x68] sm:$0xff]  ;;  %v23_v29 = vld [vmem:[%s295_s0 + $0x70] sm:$0xff]  ;;  %v146_v30 = vld [vmem:[%s295_s0 + $0xf8] sm:$0xff] }
  0x14   :  { %v24_v31 = vld [vmem:[%s295_s0 + $0x78] sm:$0xff]  ;;  %s150_s0 = scalar_lea.vmem %s121_s13, 1024 }
  0x15   :  { %p151_p0 = scmp.ne.s32.totalorder %s121_s13, %s150_s0  ;;  %p156_p2 = scmp.lt.s32.totalorder %s150_s0, %s150_s0 }
  0x16   :  { %83 = vxpose.xlu1.b32.cont [6/16] (narrow) %v136_v10, 32 }
  0x17   :  { %30 = vxpose.xlu0.b32.cont [6/16] (narrow) %v14_v11, 32  ;;  %p157_p3 = por %p156_p2, %p155_p1 }
  0x19   :  { %p158_p4 = pnand %p157_p3, %p151_p0 }
  0x1a   :  { %84 = vxpose.xlu1.b32.cont [7/16] (narrow) %v137_v12, 32 }
  0x1b   :  { %31 = vxpose.xlu0.b32.cont [7/16] (narrow) %v15_v13, 32 }
  0x1e   :  { %85 = vxpose.xlu1.b32.cont [8/16] (narrow) %v138_v14, 32 }
  0x1f   :  { %32 = vxpose.xlu0.b32.cont [8/16] (narrow) %v16_v15, 32 }
  0x22   :  { %86 = vxpose.xlu1.b32.cont [9/16] (narrow) %v139_v16, 32 }
  0x23   :  { %33 = vxpose.xlu0.b32.cont [9/16] (narrow) %v17_v17, 32 }
  0x26   :  { %87 = vxpose.xlu1.b32.cont [10/16] (narrow) %v140_v18, 32 }
  0x27   :  { %34 = vxpose.xlu0.b32.cont [10/16] (narrow) %v18_v19, 32 }
  0x2a   :  { %88 = vxpose.xlu1.b32.cont [11/16] (narrow) %v141_v20, 32 }
  0x2b   :  { %35 = vxpose.xlu0.b32.cont [11/16] (narrow) %v19_v21, 32 }
  0x2e   :  { %89 = vxpose.xlu1.b32.cont [12/16] (narrow) %v142_v22, 32 }
  0x2f   :  { %36 = vxpose.xlu0.b32.cont [12/16] (narrow) %v20_v23, 32 }
  0x32   :  { %90 = vxpose.xlu1.b32.cont [13/16] (narrow) %v143_v24, 32 }
  0x33   :  { %37 = vxpose.xlu0.b32.cont [13/16] (narrow) %v21_v25, 32 }
  0x36   :  { %91 = vxpose.xlu1.b32.cont [14/16] (narrow) %v144_v26, 32 }
  0x37   :  { %38 = vxpose.xlu0.b32.cont [14/16] (narrow) %v22_v27, 32 }
  0x3a   :  { %92 = vxpose.xlu1.b32.cont [15/16] (narrow) %v145_v28, 32 }
  0x3b   :  { %39 = vxpose.xlu0.b32.cont [15/16] (narrow) %v23_v29, 32 }
  0x3e   :  { %93 = vxpose.xlu1.b32.end [16/16] (narrow) %v146_v30, 32 }
  0x3f   :  { %40 = vxpose.xlu0.b32.end [16/16] (narrow) %v24_v31, 32 }
  0x82   :  { %v94_v32 = vpop.trf.xlu1 }
  0x83   :  { %v41_v33 = vpop.trf.xlu0  ;;  %111 = vst [vmem:[#allocation2 + $0x20] sm:$0xff] %v94_v32 }
  0x84   :  { %57 = vst [vmem:[#allocation2] sm:$0xff] %v41_v33 }
  0x86   :  { %v95_v34 = vpop.trf.xlu1 }
  0x87   :  { %v42_v35 = vpop.trf.xlu0  ;;  %112 = vst [vmem:[#allocation2 + $0x28] sm:$0xff] %v95_v34 }
  0x88   :  { %58 = vst [vmem:[#allocation2 + $0x8] sm:$0xff] %v42_v35 }
  0x8a   :  { %v96_v36 = vpop.trf.xlu1 }
  0x8b   :  { %v43_v37 = vpop.trf.xlu0  ;;  %113 = vst [vmem:[#allocation2 + $0x30] sm:$0xff] %v96_v36 }
  0x8c   :  { %59 = vst [vmem:[#allocation2 + $0x10] sm:$0xff] %v43_v37 }
  0x8e   :  { %v97_v38 = vpop.trf.xlu1 }
  0x8f   :  { %v44_v39 = vpop.trf.xlu0  ;;  %114 = vst [vmem:[#allocation2 + $0x38] sm:$0xff] %v97_v38 }
  0x90   :  { %60 = vst [vmem:[#allocation2 + $0x18] sm:$0xff] %v44_v39 }
  0x91   :  { %161 = shalt.err (!%p158_p4)
}
  0x92   :  { %s162_s16 = scalar_lea.hbm %s296_s1, 1024 }
  0x93   :  { %p163_p5 = scmp.ne.s32.totalorder %s296_s1, %s162_s16  ;;  %p166_p6 = scmp.lt.u32.totalorder %s162_s16, %s296_s1 }
  0x95   :  { %p168_p7 = pnand %p166_p6, %p163_p5 }
  0x97   :  { %171 = shalt.err (!%p168_p7)
}
  0x98   :  { %s175_s21 = smov 128   ;;  %s176_s22 = smov 8  }
  0x99   :  { %126 = dma.vmem_to_hbm [thread:$0]  %s121_s13, 1024, %s296_s1, [#allocation3], %s175_s21, %s175_s21, %s176_s22  }
  0x9a   :  { %172 = dma.done.wait [#allocation3], 1024  }
  0x9b   :  { %173 = vsyncadd [#allocation3], 4294966272 }
  0x9c   :  { %130 = vsyncpa [#allocation3], 1 }

</bundles_post_ra>
